<compile_context>
chip_gen: v5e
topology: v5e:2x2
jax: 0.10.0
libtpu: 0.0.40
codegen_flags: <defaults>
</compile_context>

<pallas_src>
import functools

import jax
import jax.numpy as jnp
from jax.experimental import pallas as pl
from jax.experimental.pallas import tpu as pltpu


def gcn_kernel(x_ref, adj_ref, w1_ref, b1_ref, w2_ref, b2_ref,
               w3r_ref, b3_ref, out_ref, *, inv_n, reassociate_l1, g, n):
    f32 = jnp.float32
    x = x_ref[...]                       # (G, N, F)  mxu dtype
    adj = adj_ref[...]                   # (G, N, N)  mxu dtype
    w1 = w1_ref[...]                     # (F, H1)    mxu dtype (resident)
    w2 = w2_ref[...]                     # (H1, H2)   mxu dtype (resident)
    mxu_dtype = x.dtype

    f = x.shape[-1]
    h1_dim = w1.shape[-1]
    h2_dim = w2.shape[-1]

    # ---- Layer 1: GraphConvolution + ReLU -----------------------------------
    if reassociate_l1:
        # adj @ (x @ W1 + b1) == (adj @ x) @ W1 + rowsum(adj) * b1   (exact fold)
        # rowsum uses the same (possibly bf16) adj values fed to the MXU, with
        # f32 accumulation -> consistent with the MXU's own accumulation.
        rowsum = jnp.sum(adj.astype(f32), axis=-1, keepdims=True)     # (G, N, 1)
        ax = jnp.einsum('gij,gjf->gif', adj, x,
                        preferred_element_type=f32)                   # (G, N, F)
        s1 = jnp.dot(ax.reshape(g * n, f).astype(mxu_dtype), w1,
                     preferred_element_type=f32)                      # (G*N, H1)
        h1 = jnp.maximum(
            s1.reshape(g, n, h1_dim) + rowsum * b1_ref[...], 0.0)     # (G, N, H1)
    else:
        s1 = jnp.dot(x.reshape(g * n, f), w1,
                     preferred_element_type=f32) + b1_ref[...]        # (G*N, H1)
        h1 = jnp.maximum(
            jnp.einsum('gij,gjh->gih', adj,
                       s1.reshape(g, n, h1_dim).astype(mxu_dtype),
                       preferred_element_type=f32), 0.0)              # (G, N, H1)

    # F.dropout(..., training=self.training): inference mode -> identity.
    # TODO(synk): training-mode dropout (pltpu.prng_random_bits mask) not emitted.

    # ---- Layer 2: GraphConvolution + ReLU -----------------------------------
    s2 = jnp.dot(h1.reshape(g * n, h1_dim).astype(mxu_dtype), w2,
                 preferred_element_type=f32) + b2_ref[...]            # (G*N, H2)
    h2 = jnp.maximum(
        jnp.einsum('gij,gjh->gih', adj,
                   s2.reshape(g, n, h2_dim).astype(mxu_dtype),
                   preferred_element_type=f32), 0.0)                  # (G, N, H2)

    # ---- Fused ave_pooling + nn.Linear(nhid2, 1) -----------------------------
    # mean(h2_g, 0) @ W3 + b3 == (1/N) * sum_{n,h}(h2_g * W3^T) + b3 per graph.
    # A 1-wide matmul is the worst MXU shape -> VPU multiply + XLU reduces.
    t = jnp.sum(h2 * w3r_ref[...][None], axis=-1)                     # (G, N) f32
    pooled_lin = jnp.sum(t, axis=-1, keepdims=True)                   # (G, 1) f32
    # Lane-dense (1, G) store: graph index on the lane axis.
    out_ref[...] = (pooled_lin * inv_n).reshape(1, g) + b3_ref[...]


def gcn_forward(x, adj, w1, b1, w2, b2, w3, b3, *, mxu_dtype=jnp.bfloat16,
                graphs_per_step=None):
    """Batched GCN forward.  x: (B, N, F), adj: (B, N, N)  ->  (B, 1)."""
    b, n, f = x.shape
    h1 = w1.shape[1]
    h2 = w2.shape[1]

    # Default: 2 grid steps so v7x still shards the batch across its 2 TCs;
    # v5e/v6e (single TC) simply see a 2-iteration serial loop.
    if graphs_per_step is None:
        graphs_per_step = b // 2 if (b >= 2 and b % 2 == 0) else b
    g = graphs_per_step
    assert b % g == 0, "batch must be divisible by graphs_per_step"
    steps = b // g

    # Ship MXU operands already in mxu_dtype: no per-step re-cast of resident
    # weights, and bf16 x/adj halves the dominant HBM->VMEM bytes.
    x_m = x.astype(mxu_dtype)
    adj_m = adj.astype(mxu_dtype)
    w1_m = w1.astype(mxu_dtype)
    w2_m = w2.astype(mxu_dtype)
    # Epilogue operands stay f32 (VPU/XLU path).
    w3r = w3.reshape(1, h2).astype(jnp.float32)   # (H2,1) -> lane-dense row
    b1r = b1.reshape(1, h1).astype(jnp.float32)
    b2r = b2.reshape(1, h2).astype(jnp.float32)
    b3r = b3.reshape(1, 1).astype(jnp.float32)

    # Reassociate layer 1 when it shrinks the adj contraction width (F vs H1);
    # the bias fold keeps it exact for any adj.
    reassociate_l1 = f < h1

    # Advisory cost hint so XLA can schedule around the custom call.
    flops_l1 = (2 * n * n * f + 2 * n * f * h1) if reassociate_l1 \
        else (2 * n * f * h1 + 2 * n * n * h1)
    flops = b * (flops_l1 + 2 * n * h1 * h2 + 2 * n * n * h2 + 2 * n * h2)
    isz = jnp.dtype(mxu_dtype).itemsize
    bytes_accessed = (isz * (x.size + adj.size + w1.size + w2.size)
                      + 4 * (b1r.size + b2r.size + w3r.size + b3r.size + b))

    kernel = functools.partial(gcn_kernel, inv_n=1.0 / n,
                               reassociate_l1=reassociate_l1, g=g, n=n)

    grid_spec = pltpu.PrefetchScalarGridSpec(
        num_scalar_prefetch=0,
        grid=(steps,),                                       # G graphs / step
        in_specs=[
            pl.BlockSpec((g, n, f), lambda i: (i, 0, 0)),    # x   (G graphs)
            pl.BlockSpec((g, n, n), lambda i: (i, 0, 0)),    # adj (G graphs)
            pl.BlockSpec((f, h1), lambda i: (0, 0)),         # W1  (resident)
            pl.BlockSpec((1, h1), lambda i: (0, 0)),         # b1
            pl.BlockSpec((h1, h2), lambda i: (0, 0)),        # W2  (resident)
            pl.BlockSpec((1, h2), lambda i: (0, 0)),         # b2
            pl.BlockSpec((1, h2), lambda i: (0, 0)),         # W3 as a row
            pl.BlockSpec((1, 1), lambda i: (0, 0)),          # b3
        ],
        # Lane-dense (1, G) output row per step (graph index on lane axis).
        out_specs=pl.BlockSpec((None, 1, g), lambda i: (i, 0, 0)),
    )

    out = pl.pallas_call(
        kernel,
        out_shape=jax.ShapeDtypeStruct((steps, 1, g), jnp.float32),
        grid_spec=grid_spec,
        compiler_params=pltpu.CompilerParams(
            dimension_semantics=("parallel",)),              # 2x on v7x (2 TCs)
        cost_estimate=pl.CostEstimate(
            flops=flops, transcendentals=0, bytes_accessed=bytes_accessed),
    )(x_m, adj_m, w1_m, b1r, w2_m, b2r, w3r, b3r)
    return out.reshape(b, 1)


def gcn_forward_single(x, adj, w1, b1, w2, b2, w3, b3, **kw):
    """Exact equivalent of the PyTorch module's forward for one graph."""
    return gcn_forward(x[None], adj[None], w1, b1, w2, b2, w3, b3, **kw)[0]


def _reference(x, adj, w1, b1, w2, b2, w3, b3):
    def one(xg, ag):
        h1 = jnp.maximum(ag @ (xg @ w1 + b1), 0.0)
        h2 = jnp.maximum(ag @ (h1 @ w2 + b2), 0.0)
        pooled = jnp.mean(h2, axis=0, keepdims=True)
        return (pooled @ w3 + b3).reshape(1)
    return jax.vmap(one)(x, adj)                             # (B, 1)


if __name__ == "__main__":
    # B graphs of N nodes each: nfeat -> nhid1 -> nhid2 -> 1
    B, N, NFEAT, NHID1, NHID2 = 8, 16, 32, 64, 32

    key = jax.random.PRNGKey(0)
    kx, kadj, k1, k2, k3, kb1, kb2, kb3 = jax.random.split(key, 8)

    x = jax.random.normal(kx, (B, N, NFEAT), dtype=jnp.float32)

    # Symmetric, row-normalized adjacency with self-loops (typical GCN input).
    a = (jax.random.uniform(kadj, (B, N, N)) > 0.7).astype(jnp.float32)
    a = jnp.maximum(a, jnp.swapaxes(a, -1, -2)) + jnp.eye(N, dtype=jnp.float32)
    adj = a / jnp.sum(a, axis=-1, keepdims=True)

    # Deterministic parameter init (uniform, Kipf-style stdv = 1/sqrt(fan_out)).
    def init_w(k, fan_in, fan_out):
        stdv = 1.0 / jnp.sqrt(fan_out)
        return jax.random.uniform(k, (fan_in, fan_out), jnp.float32, -stdv, stdv)

    w1 = init_w(k1, NFEAT, NHID1)
    b1 = jax.random.uniform(kb1, (1, NHID1), jnp.float32, -0.1, 0.1)
    w2 = init_w(k2, NHID1, NHID2)
    b2 = jax.random.uniform(kb2, (1, NHID2), jnp.float32, -0.1, 0.1)
    w3 = init_w(k3, NHID2, 1)
    b3 = jax.random.uniform(kb3, (1, 1), jnp.float32, -0.1, 0.1)

    ref = _reference(x, adj, w1, b1, w2, b2, w3, b3)

    # f32 MXU path: bit-level-close to the reference.
    out_f32 = jax.block_until_ready(
        gcn_forward(x, adj, w1, b1, w2, b2, w3, b3, mxu_dtype=jnp.float32))
    assert out_f32.shape == (B, 1)
    assert jnp.allclose(out_f32, ref, atol=1e-4, rtol=1e-4), (out_f32, ref)

    # bf16 MXU path (default; v6e/v7x MXU rate), f32 accumulation + f32 epilogue.
    out_bf16 = jax.block_until_ready(gcn_forward(x, adj, w1, b1, w2, b2, w3, b3))
    assert out_bf16.shape == (B, 1)
    assert jnp.allclose(out_bf16, ref, atol=5e-2, rtol=5e-2), (out_bf16, ref)

    # Single-step variant (grid=(1,), all graphs in one block) agrees too.
    out_one_step = jax.block_until_ready(
        gcn_forward(x, adj, w1, b1, w2, b2, w3, b3,
                    mxu_dtype=jnp.float32, graphs_per_step=B))
    assert jnp.allclose(out_one_step, out_f32, atol=1e-5), (out_one_step, out_f32)

    # Single-graph wrapper (module-equivalent signature) matches the batched run.
    one = jax.block_until_ready(
        gcn_forward_single(x[0], adj[0], w1, b1, w2, b2, w3, b3,
                           mxu_dtype=jnp.float32))
    assert jnp.allclose(one, out_f32[0], atol=1e-5), (one, out_f32[0])

    print("KERNEL_OK")
</pallas_src>

<mosaic_0001>
module attributes {stable_mosaic.version = 11 : i64} {
  func.func @gcn_kernel(%arg0: i32, %arg1: memref<4x16x32xf32, #tpu.memory_space<vmem>>, %arg2: memref<4x16x16xf32, #tpu.memory_space<vmem>>, %arg3: memref<32x64xf32, #tpu.memory_space<vmem>>, %arg4: memref<1x64xf32, #tpu.memory_space<vmem>>, %arg5: memref<64x32xf32, #tpu.memory_space<vmem>>, %arg6: memref<1x32xf32, #tpu.memory_space<vmem>>, %arg7: memref<1x32xf32, #tpu.memory_space<vmem>>, %arg8: memref<1x1xf32, #tpu.memory_space<vmem>>, %arg9: memref<1x1x4xf32, #tpu.memory_space<vmem>>) attributes {dimension_semantics = [#tpu.dimension_semantics<parallel>], iteration_bounds = array<i64: 2>, scalar_prefetch = 0 : i64, scratch_operands = 0 : i64, tpu.core_type = #tpu.core_type<tc>, window_params = [{transform_indices = @transform_0, window_bounds = array<i64: 4, 16, 32>}, {transform_indices = @transform_1, window_bounds = array<i64: 4, 16, 16>}, {pipeline_mode = #tpu.pipeline_mode<synchronous>, transform_indices = @transform_2, window_bounds = array<i64: 32, 64>}, {pipeline_mode = #tpu.pipeline_mode<synchronous>, transform_indices = @transform_3, window_bounds = array<i64: 1, 64>}, {pipeline_mode = #tpu.pipeline_mode<synchronous>, transform_indices = @transform_4, window_bounds = array<i64: 64, 32>}, {pipeline_mode = #tpu.pipeline_mode<synchronous>, transform_indices = @transform_5, window_bounds = array<i64: 1, 32>}, {pipeline_mode = #tpu.pipeline_mode<synchronous>, transform_indices = @transform_6, window_bounds = array<i64: 1, 32>}, {pipeline_mode = #tpu.pipeline_mode<synchronous>, transform_indices = @transform_7, window_bounds = array<i64: 1, 1>}, {transform_indices = @transform_8, window_bounds = array<i64: 1, 1, 4>}]} {
    %c0 = arith.constant 0 : index
    %c0_0 = arith.constant 0 : index
    %c0_1 = arith.constant 0 : index
    %0 = vector.load %arg1[%c0, %c0_0, %c0_1] : memref<4x16x32xf32, #tpu.memory_space<vmem>>, vector<4x16x32xf32>
    %c0_2 = arith.constant 0 : index
    %c0_3 = arith.constant 0 : index
    %c0_4 = arith.constant 0 : index
    %1 = vector.load %arg2[%c0_2, %c0_3, %c0_4] : memref<4x16x16xf32, #tpu.memory_space<vmem>>, vector<4x16x16xf32>
    %c0_5 = arith.constant 0 : index
    %c0_6 = arith.constant 0 : index
    %2 = vector.load %arg3[%c0_5, %c0_6] : memref<32x64xf32, #tpu.memory_space<vmem>>, vector<32x64xf32>
    %c0_7 = arith.constant 0 : index
    %c0_8 = arith.constant 0 : index
    %3 = vector.load %arg5[%c0_7, %c0_8] : memref<64x32xf32, #tpu.memory_space<vmem>>, vector<64x32xf32>
    %cst = arith.constant dense<0.000000e+00> : vector<4x16xf32>
    %4 = vector.multi_reduction <add>, %1, %cst [2] : vector<4x16x16xf32> to vector<4x16xf32>
    %5 = vector.shape_cast %4 : vector<4x16xf32> to vector<4x16x1xf32>
    "tpu.trace_start"() <{level = 10 : i32, message = "gij,gjf->gif"}> : () -> ()
    %cst_9 = arith.constant dense<0.000000e+00> : vector<4x16x32xf32>
    %6 = tpu.matmul %1, %0, %cst_9 {dimension_numbers = #tpu.dot_dimension_numbers<[2], [1], [1], [2], [0, 0, 0, 1, 1, 2], [0], [0]>} : vector<4x16x16xf32>, vector<4x16x32xf32>, vector<4x16x32xf32> -> vector<4x16x32xf32>
    "tpu.trace_stop"() : () -> ()
    %7 = vector.shape_cast %6 : vector<4x16x32xf32> to vector<64x32xf32>
    %cst_10 = arith.constant dense<0.000000e+00> : vector<64x64xf32>
    %8 = tpu.matmul %7, %2, %cst_10 {dimension_numbers = #tpu.dot_dimension_numbers<[1], [0], [0], [1], [0, 0, 1, 1], [], []>} : vector<64x32xf32>, vector<32x64xf32>, vector<64x64xf32> -> vector<64x64xf32>
    %9 = vector.shape_cast %8 : vector<64x64xf32> to vector<4x16x64xf32>
    %c0_11 = arith.constant 0 : index
    %c0_12 = arith.constant 0 : index
    %10 = vector.load %arg4[%c0_11, %c0_12] : memref<1x64xf32, #tpu.memory_space<vmem>>, vector<1x64xf32>
    %11 = vector.shape_cast %10 : vector<1x64xf32> to vector<1x1x64xf32>
    %12 = vector.broadcast %5 : vector<4x16x1xf32> to vector<4x16x64xf32>
    %13 = vector.broadcast %11 : vector<1x1x64xf32> to vector<4x16x64xf32>
    %14 = arith.mulf %12, %13 : vector<4x16x64xf32>
    %15 = arith.addf %9, %14 : vector<4x16x64xf32>
    %cst_13 = arith.constant 0.000000e+00 : f32
    %16 = vector.broadcast %cst_13 : f32 to vector<4x16x64xf32>
    %17 = arith.maximumf %15, %16 : vector<4x16x64xf32>
    %18 = vector.shape_cast %17 : vector<4x16x64xf32> to vector<64x64xf32>
    %cst_14 = arith.constant dense<0.000000e+00> : vector<64x32xf32>
    %19 = tpu.matmul %18, %3, %cst_14 {dimension_numbers = #tpu.dot_dimension_numbers<[1], [0], [0], [1], [0, 0, 1, 1], [], []>} : vector<64x64xf32>, vector<64x32xf32>, vector<64x32xf32> -> vector<64x32xf32>
    %c0_15 = arith.constant 0 : index
    %c0_16 = arith.constant 0 : index
    %20 = vector.load %arg6[%c0_15, %c0_16] : memref<1x32xf32, #tpu.memory_space<vmem>>, vector<1x32xf32>
    %21 = vector.broadcast %20 : vector<1x32xf32> to vector<64x32xf32>
    %22 = arith.addf %19, %21 : vector<64x32xf32>
    %23 = vector.shape_cast %22 : vector<64x32xf32> to vector<4x16x32xf32>
    "tpu.trace_start"() <{level = 10 : i32, message = "gij,gjh->gih"}> : () -> ()
    %cst_17 = arith.constant dense<0.000000e+00> : vector<4x16x32xf32>
    %24 = tpu.matmul %1, %23, %cst_17 {dimension_numbers = #tpu.dot_dimension_numbers<[2], [1], [1], [2], [0, 0, 0, 1, 1, 2], [0], [0]>} : vector<4x16x16xf32>, vector<4x16x32xf32>, vector<4x16x32xf32> -> vector<4x16x32xf32>
    "tpu.trace_stop"() : () -> ()
    %cst_18 = arith.constant 0.000000e+00 : f32
    %25 = vector.broadcast %cst_18 : f32 to vector<4x16x32xf32>
    %26 = arith.maximumf %24, %25 : vector<4x16x32xf32>
    %c0_19 = arith.constant 0 : index
    %c0_20 = arith.constant 0 : index
    %27 = vector.load %arg7[%c0_19, %c0_20] : memref<1x32xf32, #tpu.memory_space<vmem>>, vector<1x32xf32>
    %28 = vector.shape_cast %27 : vector<1x32xf32> to vector<1x1x32xf32>
    %29 = vector.broadcast %28 : vector<1x1x32xf32> to vector<4x16x32xf32>
    %30 = arith.mulf %26, %29 : vector<4x16x32xf32>
    %cst_21 = arith.constant dense<0.000000e+00> : vector<4x16xf32>
    %31 = vector.multi_reduction <add>, %30, %cst_21 [2] : vector<4x16x32xf32> to vector<4x16xf32>
    %cst_22 = arith.constant dense<0.000000e+00> : vector<4xf32>
    %32 = vector.multi_reduction <add>, %31, %cst_22 [1] : vector<4x16xf32> to vector<4xf32>
    %33 = vector.shape_cast %32 : vector<4xf32> to vector<4x1xf32>
    %cst_23 = arith.constant 6.250000e-02 : f32
    %34 = vector.broadcast %cst_23 : f32 to vector<4x1xf32>
    %35 = arith.mulf %33, %34 : vector<4x1xf32>
    %36 = vector.shape_cast %35 : vector<4x1xf32> to vector<1x4xf32>
    %c0_24 = arith.constant 0 : index
    %c0_25 = arith.constant 0 : index
    %37 = vector.load %arg8[%c0_24, %c0_25] : memref<1x1xf32, #tpu.memory_space<vmem>>, vector<1x1xf32>
    %38 = vector.broadcast %37 : vector<1x1xf32> to vector<1x4xf32>
    %39 = arith.addf %36, %38 : vector<1x4xf32>
    %c0_26 = arith.constant 0 : index
    %c0_27 = arith.constant 0 : index
    %c0_28 = arith.constant 0 : index
    %40 = vector.load %arg9[%c0_26, %c0_27, %c0_28] : memref<1x1x4xf32, #tpu.memory_space<vmem>>, vector<1x1x4xf32>
    %41 = vector.shape_cast %40 : vector<1x1x4xf32> to vector<1x4xf32>
    %42 = vector.shape_cast %39 : vector<1x4xf32> to vector<1x1x4xf32>
    tpu.vector_store %arg9[%c0_26, %c0_27, %c0_28], %42 {strides = array<i32>} : memref<1x1x4xf32, #tpu.memory_space<vmem>>, vector<1x1x4xf32>,
    return
  }
  func.func @transform_0(%arg0: i32) -> (i32, i32, i32) {
    %c0_i32 = arith.constant 0 : i32
    %c0_i32_0 = arith.constant 0 : i32
    %c0_i32_1 = arith.constant 0 : i32
    return %arg0, %c0_i32, %c0_i32_0 : i32, i32, i32
  }
  func.func @transform_1(%arg0: i32) -> (i32, i32, i32) {
    %c0_i32 = arith.constant 0 : i32
    %c0_i32_0 = arith.constant 0 : i32
    %c0_i32_1 = arith.constant 0 : i32
    return %arg0, %c0_i32, %c0_i32_0 : i32, i32, i32
  }
  func.func @transform_2(%arg0: i32) -> (i32, i32) {
    %c0_i32 = arith.constant 0 : i32
    %c0_i32_0 = arith.constant 0 : i32
    %c0_i32_1 = arith.constant 0 : i32
    return %c0_i32, %c0_i32_0 : i32, i32
  }
  func.func @transform_3(%arg0: i32) -> (i32, i32) {
    %c0_i32 = arith.constant 0 : i32
    %c0_i32_0 = arith.constant 0 : i32
    %c0_i32_1 = arith.constant 0 : i32
    return %c0_i32, %c0_i32_0 : i32, i32
  }
  func.func @transform_4(%arg0: i32) -> (i32, i32) {
    %c0_i32 = arith.constant 0 : i32
    %c0_i32_0 = arith.constant 0 : i32
    %c0_i32_1 = arith.constant 0 : i32
    return %c0_i32, %c0_i32_0 : i32, i32
  }
  func.func @transform_5(%arg0: i32) -> (i32, i32) {
    %c0_i32 = arith.constant 0 : i32
    %c0_i32_0 = arith.constant 0 : i32
    %c0_i32_1 = arith.constant 0 : i32
    return %c0_i32, %c0_i32_0 : i32, i32
  }
  func.func @transform_6(%arg0: i32) -> (i32, i32) {
    %c0_i32 = arith.constant 0 : i32
    %c0_i32_0 = arith.constant 0 : i32
    %c0_i32_1 = arith.constant 0 : i32
    return %c0_i32, %c0_i32_0 : i32, i32
  }
  func.func @transform_7(%arg0: i32) -> (i32, i32) {
    %c0_i32 = arith.constant 0 : i32
    %c0_i32_0 = arith.constant 0 : i32
    %c0_i32_1 = arith.constant 0 : i32
    return %c0_i32, %c0_i32_0 : i32, i32
  }
  func.func @transform_8(%arg0: i32) -> (i32, i32, i32) {
    %c0_i32 = arith.constant 0 : i32
    %c0_i32_0 = arith.constant 0 : i32
    %c0_i32_1 = arith.constant 0 : i32
    return %arg0, %c0_i32, %c0_i32_0 : i32, i32, i32
  }
}

</mosaic_0001>

<bundles_post_ra>
// kernel: tpu_custom_call.1
= control target key start
LH: loop header
LB: loop body
LE: loop exit
PB: predicated region body
PF: predicated region fallthrough
CT: control target
= control target key end

     0   :  { %s1611_s0 = inlined_call_operand.hbm [shape: f32[8,16,32], index: 0, kind: input, shape index: {}]   ;;  %s1612_s1 = inlined_call_operand.hbm [shape: f32[8,16,16], index: 1, kind: input, shape index: {}]   ;;  %s1613_s2 = inlined_call_operand.vmem [shape: f32[32,64], index: 2, kind: input, shape index: {}]   ;;  %s1614_s3 = inlined_call_operand.vmem [shape: f32[1,64], index: 3, kind: input, shape index: {}]   ;;  %s1615_s4 = inlined_call_operand.vmem [shape: f32[64,32], index: 4, kind: input, shape index: {}]   ;;  %s1616_s5 = inlined_call_operand.vmem [shape: f32[1,32], index: 5, kind: input, shape index: {}]   ;;  %s1617_s6 = inlined_call_operand.vmem [shape: f32[1,32], index: 6, kind: input, shape index: {}]   ;;  %s1618_s7 = inlined_call_operand.<no memory space> [shape: f32[1,1], index: 7, kind: input, shape index: {}]   ;;  %s1619_s8 = inlined_call_operand.hbm [shape: f32[2,1,4], index: 8, kind: output, shape index: {}]  }
   0x1   :  { %1626 = sst [smem:[#allocation16_spill]] %s1611_s0  ;;  %v13_v0 = vstv %s1618_s7 }
   0x2   :  { %14 = vst [vmem:[#allocation2] sm:$0x1] %v13_v0 }
   0x3   :  { %15 = vsyncpa [#allocation4], 0 }
   0x4   :  { %17 = vsyncpa [#allocation4 + $0x1], 0 }
   0x5   :  { %18 = vsyncpa [#allocation7], 0 }
   0x6   :  { %20 = vsyncpa [#allocation7 + $0x1], 0 }
   0x7   :  { %21 = vsyncpa [#allocation5], 0 }
   0x8   :  { %23 = vsyncpa [#allocation5 + $0x1], 0  ;;  %s1299_s29 = smov 0   ;;  %s1301_s30 = smov 0  }
   0x9   :  { %s1303_s9 = smov 0   ;;  %s1305_s10 = smov 0  }
   0xa LB: > { %1627 = sst [smem:[#allocation12_spill]] %s1242_s9  ;;  %s1320_s7 = sadd.s32 4294967295, %s1246_s10   ;;  %s1246_s10 = sphi %s1305_s10, %s1642_s10   ;;  %s1242_s9 = sphi %s1303_s9, %s1644_s9   ;;  %s1238_s30 = sphi %s1301_s30, %s1646_s30   ;;  %s1234_s29 = sphi %s1299_s29, %s1645_s29  }
   0xb   : > { %s993_s11 = sadd.s32 4294967294, %s1246_s10   ;;  %s1324_s12 = sadd.s32 1, %s1246_s10  }
   0xc   : > { %1628 = sst [smem:[#allocation13_spill]] %s1324_s12  ;;  %s36_s13 = sadd.s32 1, %s1242_s9 }
   0xd   : > { %s33_s14 = ssub.s32 %s1246_s10, %s1324_s12  ;;  %p43_p0 = scmp.ne.s32.totalorder %s1242_s9, %s1238_s30 }
   0xe   : > { %p34_p1 = scmp.eq.s32.totalorder %s33_s14, 0  ;;  %p44_p2 = scmp.eq.s32.totalorder %s1246_s10, 0 }
   0xf   : > { %p49_p3 = scmp.ne.s32.totalorder %s1238_s30, %s1234_s29  ;;  %p50_p4 = scmp.eq.s32.totalorder %s1320_s7, 0 }
  0x10   : > { %s1336_s15 = scalar_select %p34_p1, %s1242_s9, %s36_s13  }
  0x11   : > { %p1338_p5 = por %p44_p2, %p43_p0  ;;  %p1342_p6 = por %p50_p4, %p49_p3 }
  0x12   : > { %1629 = sst [smem:[#allocation14_spill]] %s1336_s15  ;;  %p225_p7 = scmp.eq.s32.totalorder %s1320_s7, 1 }
  0x13   : > { %p231_p8 = scmp.eq.s32.totalorder %s993_s11, 1  ;;  %p1074_p10 = scmp.lt.s32.totalorder %s1246_s10, 2 }
  0x14   : > { %p1349_p11 = por %p225_p7, %p43_p0  ;;  %s1358_s20 = sand.u32 1, %s1242_s9  }
  0x15   : > { %p1353_p12 = por %p231_p8, %p49_p3  ;;  %s1621_s21 = sshll.u32 %s1246_s10, 6 }
  0x16   : > { %s1620_s22 = sshll.u32 %s1358_s20, 6  ;;  %s1635_s0 = sld [smem:[#allocation16_spill]] }
  0x17   : > { %s1633_s19 = scalar_select %p1353_p12, 1, 0 }
  0x18   : > { %s273_s27 = scalar_lea.vmem [#allocation3], %s1620_s22  ;;  %p1371_p13 = pnand %p1074_p10, %p1338_p5 }
  0x19   : > { %1634 = sst [smem:[#allocation15_spill]] %s1633_s19  ;;  %s282_s28 = sshll.u32 %s273_s27, 4  ;;  %s283_s28 = int_to_ptr.vmem [resolvable:$true] %s282_s28 }
  0x1a   : > { %p1004_p0 = scmp.ge.s32.totalorder %s1246_s10, 1  ;;  %p313_p1 = scmp.lt.s32.totalorder %s1246_s10, 3 }
  0x1b   : > { %s270_s13 = scalar_lea.sflag [#allocation4], %s1358_s20  ;;  %p1120_p3 = pneg %p1371_p13 }
  0x1c   : > { %s279_s25 = scalar_lea.hbm %s1635_s0, %s1621_s21 }
  0x1d   : > { %s280_s26 = sshll.u32 %s279_s25, 4  ;;  %s1123_s25 = scalar_lea.hbm %s1635_s0, 128  ;;  %s281_s26 = int_to_ptr.hbm [resolvable:$true] %s280_s26 }
  0x1e   : > { %s1116_s14 = sshra.s32 %s281_s26, 4  ;;  %s1117_s14 = int_to_ptr.hbm [resolvable:$true] %s1116_s14 }
  0x1f   : > { %s1118_s23 = scalar_lea.hbm %s1117_s14, 64  ;;  %p1124_p5 = scmp.lt.s32.totalorder %s1117_s14, %s1635_s0 }
  0x20   : > { %p1119_p2 = scmp.ne.s32.totalorder %s1117_s14, %s1118_s23  ;;  %p1125_p8 = scmp.lt.s32.totalorder %s1123_s25, %s1118_s23 }
  0x22   : > { %p1121_p4 = pnand %p1120_p3, %p1119_p2  ;;  %p1126_p10 = por %p1125_p8, %p1124_p5 }
  0x24   : > { %p1122_p7 = pneg %p1121_p4 }
  0x26   : > { %p1127_p9 = pnand %p1126_p10, %p1122_p7 }
  0x28   : > { %1130 = shalt.err (!%p1127_p9)
}
  0x29   : > { %s1248_s21 = smov 128   ;;  %s1249_s15 = smov 8  }
  0x2a   : > { %1066 = dma.hbm_to_vmem [thread:$0]  (!%p1371_p13), %s281_s26, 1024, %s283_s28, %s270_s13, %s1248_s21, %s1248_s21, %s1249_s15  }
  0x2b   : > { %p1395_p2 = pnand %p1004_p0, %p313_p1  ;;  %s1638_s14 = sshll.u32 %s1246_s10, 6 }
  0x2c   : > { %s302_s24 = scalar_lea.hbm %s1612_s1, %s1638_s14  ;;  %s1639_s27 = sshll.u32 %s1358_s20, 6 }
  0x2d   : > { %s303_s25 = sshll.u32 %s302_s24, 4  ;;  %s296_s0 = scalar_lea.vmem [#allocation6], %s1639_s27  ;;  %s304_s25 = int_to_ptr.hbm [resolvable:$true] %s303_s25 }
  0x2e   : > { %s305_s9 = sshll.u32 %s296_s0, 4  ;;  %s293_s12 = scalar_lea.sflag [#allocation7], %s1358_s20  ;;  %s306_s9 = int_to_ptr.vmem [resolvable:$true] %s305_s9 }
  0x2f   : > { %s1146_s19 = sshra.s32 %s304_s25, 4  ;;  %s1153_s23 = scalar_lea.hbm %s1612_s1, 128  ;;  %s1147_s19 = int_to_ptr.hbm [resolvable:$true] %s1146_s19 }
  0x30   : > { %s1148_s26 = scalar_lea.hbm %s1147_s19, 64  ;;  %p1154_p4 = scmp.lt.s32.totalorder %s1147_s19, %s1612_s1 }
  0x31   : > { %p1149_p9 = scmp.ne.s32.totalorder %s1147_s19, %s1148_s26  ;;  %p1155_p7 = scmp.lt.s32.totalorder %s1153_s23, %s1148_s26 }
  0x33   : > { %p1151_p0 = pnand %p1149_p9, %p1120_p3  ;;  %p1156_p5 = por %p1155_p7, %p1154_p4 }
  0x35   : > { %p1152_p1 = pneg %p1151_p0 }
  0x37   : > { %p1157_p8 = pnand %p1156_p5, %p1152_p1 }
  0x39   : > { %1160 = shalt.err (!%p1157_p8)
}
  0x3a   : > { %1069 = dma.hbm_to_vmem [thread:$0]  (!%p1371_p13), %s304_s25, 1024, %s306_s9, %s293_s12, %s1248_s21, %s1248_s21, %s1249_s15  }
  0x3b   : > { %317 = sbr.rel (%p1395_p2) target bundleno = 890 (0x37a), region = 52  ;;  %s1421_s0 = sand.u32 (!%p1395_p2), 1, %s1238_s30  }
  0x3c   : > { %s1005_s20 = sshll.u32 (!%p1395_p2), %s1421_s0, 6  ;;  %s320_s24 = scalar_lea.sflag (!%p1395_p2), [#allocation4], %s1421_s0 }
  0x3d   : > { %s323_s27 = scalar_lea.vmem (!%p1395_p2), [#allocation3], %s1005_s20 }
  0x40   : > { %1221 = dma.done.wait (%p1342_p6), %s320_s24, 1024  }
  0x41   : > { %1223 = vsyncadd (%p1342_p6), %s320_s24, 4294966272  ;;  %s330_s9 = scalar_lea.sflag [#allocation7], %s1421_s0  ;;  %s1430_s12 = scalar_lea.vmem [#allocation6], %s1005_s20 }
  0x42   : > { %1225 = dma.done.wait (%p1342_p6), %s330_s9, 1024  }
  0x43   : > { %1227 = vsyncadd (%p1342_p6), %s330_s9, 4294966272  ;;  %v374_v1 = vld [vmem:[%s323_s27 + $0x8] sm:$0xff]  ;;  %v373_v2 = vld [vmem:[%s323_s27] sm:$0xff]  ;;  %vm401_vm0 = vcmask 130048   ;;  %vm542_vm1 = vcmask 261120   ;;  %vm640_vm2 = vcmask 523264   ;;  %s900_s24 = scalar_lea.hbm %s1619_s8, %s1320_s7 }
  0x44   : > { %v380_v3 = vld [vmem:[%s323_s27 + $0x38] sm:$0xff]  ;;  %446 = vmatpush.msra.mxu0 %v374_v1  ;;  %v1437_v4 = vld [vmem:[%s1430_s12] sm:$0xff]  ;;  %v379_v5 = vld [vmem:[%s323_s27 + $0x30] sm:$0xff]  ;;  %vm855_vm3 = vcmask 130112   ;;  %vm866_vm4 = vcmask 1041409   ;;  %vm868_vm5 = vcmask 1042434  }
  0x45   : > { %533 = vmatpush.msra.mxu3 %v380_v3  ;;  %v1440_v6 = vld [vmem:[%s1430_s12 + $0x30] sm:$0xff]  ;;  %v376_v7 = vld [vmem:[%s323_s27 + $0x18] sm:$0xff]  ;;  %v378_v8 = vld [vmem:[%s323_s27 + $0x28] sm:$0xff]  ;;  %v402_v21 = vsel %vm401_vm0, %v1437_v4, 0.0  ;;  %vm870_vm6 = vcmask 1043459   ;;  %vm873_vm7 = vcmask 125952  }
  0x46   : > { %447 = vmatpush.msra.mxu0 %v373_v2  ;;  %v375_v9 = vld [vmem:[%s323_s27 + $0x10] sm:$0xff]  ;;  %v377_v10 = vld [vmem:[%s323_s27 + $0x20] sm:$0xff]  ;;  %475 = vmatpush.msra.mxu1 %v376_v7  ;;  %v1466_v16 = vld [vmem:[%s1430_s12 + $0x8] sm:$0xff]  ;;  %v420_v23 = vsel %vm401_vm0, %v1440_v6, 0.0  ;;  %s370_s27 = scalar_lea.vmem [#allocation8], %s1421_s0  ;;  %vm889_vm8 = vcmask 24576  }
  0x47   : > { %534 = vmatpush.msra.mxu3 %v379_v5  ;;  %1007 = vmatmul.msk.f32.vlgmr.msra.gmra.mxu0 %vm401_vm0, %v1437_v4  ;;  %v1447_v11 = vld [vmem:[%s1430_s12 + $0x10] sm:$0xff]  ;;  %v1450_v12 = vld [vmem:[%s1430_s12 + $0x20] sm:$0xff]  ;;  %v1469_v17 = vld [vmem:[%s1430_s12 + $0x38] sm:$0xff]  ;;  %v405_v22 = vsel %vm401_vm0, %v1466_v16, 0.0  ;;  %s902_s9 = sshll.u32 %s370_s27, 4  ;;  %s892_s15 = scalar_lea.sflag [#allocation5], %s1421_s0  ;;  %s903_s9 = int_to_ptr.vmem [resolvable:$true] %s902_s9 }
  0x48   : > { %1013 = vmatmul.msk.f32.vlgmr.msra.gmra.mxu3 %vm401_vm0, %v1440_v6  ;;  %504 = vmatpush.msra.mxu2 %v378_v8  ;;  %v392_v13 = vld [vmem:[%s1613_s2 + $0x18] sm:$0xff]  ;;  %v391_v14 = vld [vmem:[%s1613_s2 + $0x10] sm:$0xff]  ;;  %v390_v15 = vld [vmem:[%s1613_s2 + $0x8] sm:$0xff]  ;;  %v408_v24 = vsel %vm401_vm0, %v1447_v11, 0.0  ;;  %v423_v25 = vsel %vm401_vm0, %v1469_v17, 0.0  ;;  %v414_v28 = vsel %vm401_vm0, %v1450_v12, 0.0 }
  0x49   : > { %579 = vmatpush.msrb.mxu0 %v392_v13  ;;  %476 = vmatpush.msra.mxu1 %v375_v9  ;;  %v1476_v18 = vld [vmem:[%s1430_s12 + $0x18] sm:$0xff]  ;;  %v1479_v19 = vld [vmem:[%s1430_s12 + $0x28] sm:$0xff]  ;;  %s904_s12 = sshll.u32 %s900_s24, 4  ;;  %s1196_s11 = scalar_lea.hbm %s1619_s8, 2  ;;  %s905_s12 = int_to_ptr.hbm [resolvable:$true] %s904_s12 }
  0x4a   : > { %505 = vmatpush.msra.mxu2 %v377_v10  ;;  %1009 = vmatmul.msk.f32.vlgmr.msra.gmra.mxu1 %vm401_vm0, %v1447_v11  ;;  %v389_v20 = vld [vmem:[%s1613_s2] sm:$0xff]  ;;  %v411_v26 = vsel %vm401_vm0, %v1476_v18, 0.0  ;;  %v417_v31 = vsel %vm401_vm0, %v1479_v19, 0.0  ;;  %v400_v32 = vld [vmem:[%s1615_s4 + $0x38] sm:$0xff]  ;;  %v399_v33 = vld [vmem:[%s1615_s4 + $0x30] sm:$0xff]  ;;  %s1190_s17 = sshra.s32 %s905_s12, 4  ;;  %s1191_s17 = int_to_ptr.hbm [resolvable:$true] %s1190_s17 }
  0x4b   : > { %1011 = vmatmul.msk.f32.vlgmr.msra.gmra.mxu2 %vm401_vm0, %v1450_v12  ;;  %580 = vmatpush.msrb.mxu0 %v391_v14  ;;  %v398_v34 = vld [vmem:[%s1615_s4 + $0x28] sm:$0xff]  ;;  %v397_v36 = vld [vmem:[%s1615_s4 + $0x20] sm:$0xff]  ;;  %v396_v41 = vld [vmem:[%s1615_s4 + $0x18] sm:$0xff]  ;;  %s1192_s19 = scalar_lea.hbm %s1191_s17, 1  ;;  %p1197_p10 = scmp.lt.s32.totalorder %s1191_s17, %s1619_s8 }
  0x4c   : > { %1045 = vmatpush.msrb.mxu2 %v392_v13  ;;  %403 = vadd.xlane.f32.xlu0 %v402_v21  ;;  %v395_v42 = vld [vmem:[%s1615_s4 + $0x10] sm:$0xff]  ;;  %v394_v43 = vld [vmem:[%s1615_s4 + $0x8] sm:$0xff]  ;;  %v393_v44 = vld [vmem:[%s1615_s4] sm:$0xff]  ;;  %p1193_p6 = scmp.ne.s32.totalorder %s1191_s17, %s1192_s19  ;;  %p1198_p2 = scmp.lt.s32.totalorder %s1196_s11, %s1192_s19 }
  0x4d   : > { %581 = vmatpush.msrb.mxu0 %v390_v15  ;;  %421 = vadd.xlane.f32.xlu2 %v420_v23  ;;  %v1113_v46 = vld [vmem:[%s1614_s3] ss:$0 sm:$0xff] }
  0x4e   : > { %1046 = vmatpush.msrb.mxu2 %v391_v14  ;;  %409 = vadd.xlane.f32.xlu1 %v408_v24  ;;  %p1194_p13 = pnand %p1193_p6, %p1349_p11  ;;  %p1199_p9 = por %p1198_p2, %p1197_p10 }
  0x4f   : > { %1008 = vmatmul.msk.f32.gmra.mxu0 %vm401_vm0, %v1466_v16  ;;  %673 = vmatpush.msrb.mxu1 %v400_v32 }
  0x50   : > { %1014 = vmatmul.msk.f32.gmra.mxu3 %vm401_vm0, %v1469_v17  ;;  %1047 = vmatpush.msrb.mxu2 %v390_v15  ;;  %p1195_p3 = pneg %p1194_p13 }
  0x51   : > { %582 = vmatpush.msrb.mxu0 %v389_v20  ;;  %1049 = vmatpush.msrb.mxu3 %v400_v32 }
  0x52   : > { %1010 = vmatmul.msk.f32.gmra.mxu1 %vm401_vm0, %v1476_v18  ;;  %1048 = vmatpush.msrb.mxu2 %v389_v20  ;;  %p1200_p0 = pnand %p1199_p9, %p1195_p3 }
  0x53   : > { %1012 = vmatmul.msk.f32.gmra.mxu2 %vm401_vm0, %v1479_v19  ;;  %674 = vmatpush.msrb.mxu1 %v399_v33 }
  0x54   : > { %406 = vadd.xlane.f32.xlu0 %v405_v22  ;;  %1050 = vmatpush.msrb.mxu3 %v399_v33 }
  0x55   : > { %415 = vadd.xlane.f32.xlu2 %v414_v28  ;;  %675 = vmatpush.msrb.mxu1 %v398_v34 }
  0x56   : > { %412 = vadd.xlane.f32.xlu1 %v411_v26  ;;  %1051 = vmatpush.msrb.mxu3 %v398_v34 }
  0x57   : > { %676 = vmatpush.msrb.mxu1 %v397_v36 }
  0x58   : > { %1052 = vmatpush.msrb.mxu3 %v397_v36 }
  0x59   : > { %677 = vmatpush.msrb.mxu1 %v396_v41 }
  0x5a   : > { %1053 = vmatpush.msrb.mxu3 %v396_v41 }
  0x5b   : > { %678 = vmatpush.msrb.mxu1 %v395_v42 }
  0x5c   : > { %424 = vadd.xlane.f32.xlu0 %v423_v25  ;;  %1054 = vmatpush.msrb.mxu3 %v395_v42 }
  0x5d   : > { %679 = vmatpush.msrb.mxu1 %v394_v43 }
  0x5e   : > { %418 = vadd.xlane.f32.xlu1 %v417_v31  ;;  %1055 = vmatpush.msrb.mxu3 %v394_v43  ;;  %v1114_v31 = vld [vmem:[%s1616_s5] ss:$0 sm:$0xff] }
  0x5f   : > { %680 = vmatpush.msrb.mxu1 %v393_v44 }
  0x60   : > { %1056 = vmatpush.msrb.mxu3 %v393_v44 }
  0xbf   : > { %v404_v45 = vpop.xlane.xlu0 %403 }
  0xc0   : > { %v612_v47 = vmul.f32 %v1113_v46, %v404_v45  ;;  %v422_v53 = vpop.xlane.xlu2 %421 }
  0xc1   : > { %v410_v55 = vpop.xlane.xlu1 %409  ;;  %v618_v57 = vmul.f32 %v1113_v46, %v422_v53 }
  0xc2   : > { %v614_v60 = vmul.f32 %v1113_v46, %v410_v55 }
  0xc4   : > { %v449_v27 = vpop.f32.mrf.mxu0 }
  0xc5   : > { %1015 = vmatmul.msk.f32.vlgmr.msrb.gmra.mxu0 %vm542_vm1, %v449_v27 }
  0xc7   : > { %v478_v35 = vpop.f32.mrf.mxu1  ;;  %v407_v50 = vpop.xlane.xlu0 %406 }
  0xc8   : > { %v613_v52 = vmul.f32 %v1113_v46, %v407_v50  ;;  %v416_v15 = vpop.xlane.xlu2 %415 }
  0xc9   : > { %v413_v3 = vpop.xlane.xlu1 %412  ;;  %v616_v21 = vmul.f32 %v1113_v46, %v416_v15 }
  0xca   : > { %v615_v8 = vmul.f32 %v1113_v46, %v413_v3 }
  0xcb   : > { %v536_v29 = vpop.f32.mrf.mxu3 }
  0xcc   : > { %1021 = vmatmul.msk.f32.vlgmr.msrb.gmra.mxu2 %vm542_vm1, %v536_v29  ;;  %v452_v30 = vpop.f32.mrf.mxu0 }
  0xcd   : > { %1016 = vmatmul.msk.f32.gmra.mxu0 %vm542_vm1, %v452_v30 }
  0xce   : > { %v507_v39 = vpop.f32.mrf.mxu2 }
  0xcf   : > { %v481_v38 = vpop.f32.mrf.mxu1  ;;  %v425_v62 = vpop.xlane.xlu0 %424 }
  0xd0   : > { %v619_v2 = vmul.f32 %v1113_v46, %v425_v62 }
  0xd1   : > { %v419_v24 = vpop.xlane.xlu1 %418 }
  0xd2   : > { %v617_v26 = vmul.f32 %v1113_v46, %v419_v24 }
  0xd3   : > { %v539_v37 = vpop.f32.mrf.mxu3 }
  0xd4   : > { %1022 = vmatmul.msk.f32.gmra.mxu2 %vm542_vm1, %v539_v37 }
  0xd5   : > { %1017 = vmatmul.msk.f32.gmra.mxu0 %vm542_vm1, %v478_v35 }
  0xd6   : > { %v510_v40 = vpop.f32.mrf.mxu2 }
  0xdd   : > { %1018 = vmatmul.msk.f32.gmra.mxu0 %vm542_vm1, %v481_v38 }
  0xe5   : > { %1019 = vmatmul.msk.f32.gmra.mxu0 %vm542_vm1, %v507_v39 }
  0xed   : > { %1020 = vmatmul.msk.f32.gmra.mxu0 %vm542_vm1, %v510_v40 }
 0x142   : > { %v584_v48 = vpop.f32.mrf.mxu0 }
 0x143   : > { %v620_v49 = vadd.f32 %v612_v47, %v584_v48 }
 0x145   : > { %v628_v51 = vmax.f32 %v620_v49, 0.0 }
 0x147   : > { %1023 = vmatmul.msk.f32.vlgmr.msrb.gmra.mxu1 %vm640_vm2, %v628_v51 }
 0x14a   : > { %v587_v54 = vpop.f32.mrf.mxu0 }
 0x14b   : > { %v621_v56 = vadd.f32 %v613_v52, %v587_v54 }
 0x14d   : > { %v629_v58 = vmax.f32 %v621_v56, 0.0 }
 0x14f   : > { %v602_v59 = vpop.f32.mrf.mxu2  ;;  %1024 = vmatmul.msk.f32.gmra.mxu1 %vm640_vm2, %v629_v58 }
 0x150   : > { %v626_v61 = vadd.f32 %v618_v57, %v602_v59 }
 0x152   : > { %v634_v63 = vmax.f32 %v626_v61, 0.0  ;;  %v590_v0 = vpop.f32.mrf.mxu0 }
 0x153   : > { %v622_v1 = vadd.f32 %v614_v60, %v590_v0 }
 0x154   : > { %1029 = vmatmul.msk.f32.vlgmr.msrb.gmra.mxu3 %vm640_vm2, %v634_v63 }
 0x155   : > { %v630_v5 = vmax.f32 %v622_v1, 0.0 }
 0x157   : > { %v605_v7 = vpop.f32.mrf.mxu2  ;;  %1025 = vmatmul.msk.f32.gmra.mxu1 %vm640_vm2, %v630_v5 }
 0x158   : > { %v627_v9 = vadd.f32 %v619_v2, %v605_v7 }
 0x15a   : > { %v635_v10 = vmax.f32 %v627_v9, 0.0  ;;  %v593_v13 = vpop.f32.mrf.mxu0 }
 0x15b   : > { %v623_v14 = vadd.f32 %v615_v8, %v593_v13  ;;  %v1250_v13 = vmov 0  }
 0x15c   : > { %1030 = vmatmul.msk.f32.gmra.mxu3 %vm640_vm2, %v635_v10  ;;  %v878_v10 = vld [vmem:[#allocation2] sm:$0x1]  ;;  %1111 = vset.pattern.permute.xlu2 %v1250_v13 }
 0x15d   : > { %v631_v20 = vmax.f32 %v623_v14, 0.0  ;;  %1112 = vset.pattern.permute.xlu0 %v1250_v13 }
 0x15f   : > { %1026 = vmatmul.msk.f32.gmra.mxu1 %vm640_vm2, %v631_v20  ;;  %v850_v20 = vlaneseq }
 0x162   : > { %v596_v22 = vpop.f32.mrf.mxu0 }
 0x163   : > { %v624_v23 = vadd.f32 %v616_v21, %v596_v22  ;;  %v851_v22 = vand.u32 127, %v850_v20 }
 0x165   : > { %v632_v25 = vmax.f32 %v624_v23, 0.0 }
 0x167   : > { %1027 = vmatmul.msk.f32.gmra.mxu1 %vm640_vm2, %v632_v25  ;;  %v853_v25 = vadd.s32 4294967288, %v851_v22 }
 0x16a   : > { %v599_v27 = vpop.f32.mrf.mxu0 }
 0x16b   : > { %v625_v28 = vadd.f32 %v617_v26, %v599_v27 }
 0x16d   : > { %v633_v29 = vmax.f32 %v625_v28, 0.0 }
 0x16f   : > { %1028 = vmatmul.msk.f32.gmra.mxu1 %vm640_vm2, %v633_v29 }
 0x1c4   : > { %v682_v30 = vpop.f32.mrf.mxu1 }
 0x1c5   : > { %v683_v34 = vadd.f32 %v1114_v31, %v682_v30 }
 0x1cc   : > { %v685_v32 = vpop.f32.mrf.mxu1 }
 0x1cd   : > { %v686_v33 = vadd.f32 %v1114_v31, %v685_v32 }
 0x1cf   : > { %720 = vmatpush.msra.mxu2 %v686_v33 }
 0x1d1   : > { %721 = vmatpush.msra.mxu2 %v683_v34 }
 0x1d2   : > { %1031 = vmatmul.msk.f32.vlgmr.msra.gmra.mxu2 %vm401_vm0, %v1437_v4 }
 0x1d4   : > { %v688_v35 = vpop.f32.mrf.mxu1 }
 0x1d5   : > { %v689_v40 = vadd.f32 %v1114_v31, %v688_v35 }
 0x1d7   : > { %v700_v36 = vpop.f32.mrf.mxu3 }
 0x1d8   : > { %v701_v42 = vadd.f32 %v1114_v31, %v700_v36 }
 0x1da   : > { %1032 = vmatmul.msk.f32.gmra.mxu2 %vm401_vm0, %v1466_v16 }
 0x1dc   : > { %v691_v37 = vpop.f32.mrf.mxu1 }
 0x1dd   : > { %v692_v38 = vadd.f32 %v1114_v31, %v691_v37 }
 0x1df   : > { %v703_v39 = vpop.f32.mrf.mxu3  ;;  %743 = vmatpush.msra.mxu3 %v692_v38 }
 0x1e0   : > { %v704_v41 = vadd.f32 %v1114_v31, %v703_v39 }
 0x1e1   : > { %744 = vmatpush.msra.mxu3 %v689_v40 }
 0x1e2   : > { %1033 = vmatmul.msk.f32.vlgmr.msra.gmra.mxu3 %vm401_vm0, %v1447_v11  ;;  %v1115_v11 = vld [vmem:[%s1617_s6] ss:$0 sm:$0xff] }
 0x1e3   : > { %789 = vmatpush.msrb.mxu3 %v704_v41 }
 0x1e4   : > { %v694_v43 = vpop.f32.mrf.mxu1 }
 0x1e5   : > { %790 = vmatpush.msrb.mxu3 %v701_v42  ;;  %v695_v16 = vadd.f32 %v1114_v31, %v694_v43 }
 0x1ea   : > { %1034 = vmatmul.msk.f32.gmra.mxu3 %vm401_vm0, %v1476_v18 }
 0x1ec   : > { %v697_v4 = vpop.f32.mrf.mxu1 }
 0x1ed   : > { %v698_v44 = vadd.f32 %v1114_v31, %v697_v4 }
 0x1ef   : > { %766 = vmatpush.msrb.mxu2 %v698_v44 }
 0x1f1   : > { %767 = vmatpush.msrb.mxu2 %v695_v16 }
 0x1f2   : > { %1035 = vmatmul.msk.f32.vlgmr.msrb.gmra.mxu2 %vm401_vm0, %v1450_v12  ;;  %1037 = vmatmul.msk.f32.vlgmr.msrb.gmra.mxu3 %vm401_vm0, %v1440_v6 }
 0x1fa   : > { %1036 = vmatmul.msk.f32.gmra.mxu2 %vm401_vm0, %v1479_v19  ;;  %1038 = vmatmul.msk.f32.gmra.mxu3 %vm401_vm0, %v1469_v17 }
 0x255   : > { %v723_v18 = vpop.f32.mrf.mxu2 }
 0x256   : > { %v798_v45 = vmax.f32 %v723_v18, 0.0 }
 0x258   : > { %v810_v46 = vmul.f32 %v1115_v11, %v798_v45 }
 0x25a   : > { %v818_v47 = vsel %vm542_vm1, %v810_v46, 0.0 }
 0x25b   : > { %819 = vadd.xlane.f32.xlu2 %v818_v47 }
 0x25d   : > { %v726_v12 = vpop.f32.mrf.mxu2 }
 0x25e   : > { %v799_v48 = vmax.f32 %v726_v12, 0.0 }
 0x260   : > { %v811_v49 = vmul.f32 %v1115_v11, %v799_v48 }
 0x262   : > { %v821_v6 = vsel %vm542_vm1, %v811_v49, 0.0 }
 0x263   : > { %822 = vadd.xlane.f32.xlu0 %v821_v6 }
 0x265   : > { %v746_v19 = vpop.f32.mrf.mxu3 }
 0x266   : > { %v800_v50 = vmax.f32 %v746_v19, 0.0 }
 0x268   : > { %v812_v51 = vmul.f32 %v1115_v11, %v800_v50 }
 0x26a   : > { %v824_v17 = vsel %vm542_vm1, %v812_v51, 0.0 }
 0x26b   : > { %825 = vadd.xlane.f32.xlu1 %v824_v17 }
 0x26d   : > { %v749_v52 = vpop.f32.mrf.mxu3 }
 0x26e   : > { %v801_v53 = vmax.f32 %v749_v52, 0.0 }
 0x270   : > { %v813_v54 = vmul.f32 %v1115_v11, %v801_v53 }
 0x272   : > { %v827_v55 = vsel %vm542_vm1, %v813_v54, 0.0 }
 0x273   : > { %828 = vadd.xlane.f32.xlu2 %v827_v55 }
 0x275   : > { %v769_v56 = vpop.f32.mrf.mxu2  ;;  %v792_v57 = vpop.f32.mrf.mxu3 }
 0x276   : > { %v802_v58 = vmax.f32 %v769_v56, 0.0  ;;  %v804_v59 = vmax.f32 %v792_v57, 0.0 }
 0x278   : > { %v814_v60 = vmul.f32 %v1115_v11, %v802_v58  ;;  %v816_v61 = vmul.f32 %v1115_v11, %v804_v59 }
 0x27a   : > { %v830_v62 = vsel %vm542_vm1, %v814_v60, 0.0  ;;  %v836_v63 = vsel %vm542_vm1, %v816_v61, 0.0 }
 0x27b   : > { %831 = vadd.xlane.f32.xlu0 %v830_v62  ;;  %837 = vadd.xlane.f32.xlu2 %v836_v63 }
 0x27d   : > { %v772_v0 = vpop.f32.mrf.mxu2  ;;  %v795_v1 = vpop.f32.mrf.mxu3 }
 0x27e   : > { %v803_v2 = vmax.f32 %v772_v0, 0.0  ;;  %v805_v3 = vmax.f32 %v795_v1, 0.0 }
 0x280   : > { %v815_v5 = vmul.f32 %v1115_v11, %v803_v2  ;;  %v817_v7 = vmul.f32 %v1115_v11, %v805_v3 }
 0x282   : > { %v833_v8 = vsel %vm542_vm1, %v815_v5, 0.0  ;;  %v839_v9 = vsel %vm542_vm1, %v817_v7, 0.0 }
 0x283   : > { %834 = vadd.xlane.f32.xlu1 %v833_v8  ;;  %840 = vadd.xlane.f32.xlu0 %v839_v9 }
 0x293   : > { %881 = vperm.xlu2 %1111, %v878_v10  }
 0x2ce   : > { %v820_v14 = vpop.xlane.xlu2 %819 }
 0x2cf   : > { %v852_v27 = vperm.slane %v820_v14, %v851_v22 }
 0x2d6   : > { %v823_v15 = vpop.xlane.xlu0 %822 }
 0x2d7   : > { %v854_v28 = vperm.slane %v823_v15, %v853_v25 }
 0x2d9   : > { %v856_v38 = vsel %vm855_vm3, %v854_v28, %v852_v27 }
 0x2de   : > { %v826_v23 = vpop.xlane.xlu1 %825 }
 0x2df   : > { %v857_v29 = vperm.slane %v826_v23, %v851_v22 }
 0x2e6   : > { %v829_v21 = vpop.xlane.xlu2 %828 }
 0x2e7   : > { %v858_v26 = vperm.slane %v829_v21, %v853_v25 }
 0x2e9   : > { %v859_v31 = vsel %vm855_vm3, %v858_v26, %v857_v29 }
 0x2ea   : > { %v867_v41 = vsel %vm866_vm4, %v859_v31, %v856_v38 }
 0x2ee   : > { %v832_v24 = vpop.xlane.xlu0 %831  ;;  %v838_v30 = vpop.xlane.xlu2 %837 }
 0x2ef   : > { %v860_v34 = vperm.slane %v832_v24, %v851_v22  ;;  %v863_v36 = vperm.slane %v838_v30, %v851_v22 }
 0x2f6   : > { %v835_v32 = vpop.xlane.xlu1 %834  ;;  %v841_v33 = vpop.xlane.xlu0 %840 }
 0x2f7   : > { %v861_v35 = vperm.slane %v835_v32, %v853_v25  ;;  %v864_v37 = vperm.slane %v841_v33, %v853_v25  ;;  %v882_v44 = vpop.permute.xlu2 %881 }
 0x2f8   : > { %v884_v16 = vperm.slane %v882_v44, 0 }
 0x2f9   : > { %v862_v39 = vsel %vm855_vm3, %v861_v35, %v860_v34  ;;  %v865_v40 = vsel %vm855_vm3, %v864_v37, %v863_v36 }
 0x2fa   : > { %v869_v42 = vsel %vm868_vm5, %v862_v39, %v867_v41 }
 0x2fb   : > { %v871_v43 = vsel %vm870_vm6, %v865_v40, %v869_v42 }
 0x2fc   : > { %v874_v4 = vsel %vm873_vm7, %v871_v43, 0.0 }
 0x2fd   : > { %875 = vadd.xlane.f32.xlu1 %v874_v4 }
 0x370   : > { %v876_v11 = vpop.xlane.xlu1 %875 }
 0x371   : > { %v877_v18 = vmul.f32 0.0625, %v876_v11 }
 0x373   : > { %v885_v45 = vadd.f32 %v884_v16, %v877_v18 }
 0x375   : > { %v887_v46 = vperm.slane %v885_v45, %v851_v22 }
 0x377   : > { %890 = vst.msk [vmem:[%s370_s27] sm:$0x1] %vm889_vm8, %v887_v46 }
 0x378   : > { %1203 = shalt.err (!%p1200_p0)
}
 0x379   : > { %1061 = dma.vmem_to_hbm [thread:$0]  (%p1349_p11), %s903_s9, 16, %s905_s12, %s892_s15  }
 0x37a PF: > { %s916_s26 = sand.u32 1, %s1234_s29   ;;  %p1641_p1 = scmp.ge.s32.totalorder %s1246_s10, 2 }
 0x37b   : > { %s917_s28 = scalar_lea.sflag [#allocation5], %s916_s26 }
 0x37c   : > { %p1071_p4 = pnand %p1641_p1, %p1353_p12 }
 0x37e   : > { %p1072_p7 = pneg %p1071_p4 }
 0x380   : > { %1229 = dma.done.wait (%p1072_p7), %s917_s28, 16  }
 0x381   : > { %1231 = vsyncadd (%p1072_p7), %s917_s28, 4294967280  ;;  %s1642_s10 = sld [smem:[#allocation13_spill]]  ;;  %s1645_s29 = smov %s1238_s30 }
 0x382   : > { %s1643_s13 = sld [smem:[#allocation12_spill]] }
 0x383   : > { %s1644_s9 = sld [smem:[#allocation14_spill]] }
 0x387   : > { %p26_p5 = scmp.ge.s32.totalorder %s1642_s10, 4  }
 0x388   : > { %s1646_s30 = smov %s1643_s13 }
 0x389   :  { %28 = sbr.rel (!%p26_p5) target bundleno = 10 (0xa), region = 110 }
 0x38e   :  { %922 = vsyncpa [#allocation4], 1 }
 0x38f   :  { %924 = vsyncpa [#allocation4 + $0x1], 1 }
 0x390   :  { %925 = vsyncpa [#allocation7], 1 }
 0x391   :  { %927 = vsyncpa [#allocation7 + $0x1], 1 }
 0x392   :  { %928 = vsyncpa [#allocation5], 1 }
 0x393   :  { %930 = vsyncpa [#allocation5 + $0x1], 1 }

</bundles_post_ra>
